<compile_context>
chip_gen: v7x
topology: tpu7x:2x2x1
jax: 0.10.0
libtpu: 0.0.40
codegen_flags: <defaults>
</compile_context>

<pallas_src>
import functools

import jax
import jax.numpy as jnp
from jax.experimental import pallas as pl
from jax.experimental.pallas import tpu as pltpu


# ----------------------------------------------------------------------------
# Fused kernel (per batch element), parity-decomposed layout:
#   * channels on sublanes, flattened LOW-RES spatial (H*W) on lanes,
#   * 4 parity planes of cat([up, x2]) live in a zero-haloed flat VMEM scratch,
#   * one stacked ConvT matmul + one stacked K=9*Cmid conv matmul.
# ----------------------------------------------------------------------------
def _decoder_unet_kernel(x1_ref, x2p_ref, wup4_ref, wc9_ref, bup4_ref,
                         bconv_ref, mask_ref, out_ref, planes_ref, rhs_ref,
                         *, H, W, Cout, C2, Cmid, OFF):
    f32 = jnp.float32
    HW = H * W

    # --- ConvTranspose2d(k=2, s=2): ONE stacked matmul -----------------------
    # up4[kp*Cout + m, i*W+j] = sum_c w_up[c, m, ki, kj] * x1[c, i, j] + b_up[m]
    # with kp = ki*2 + kj (the four output parity planes, low resolution).
    up4 = jnp.dot(wup4_ref[...], x1_ref[...], preferred_element_type=f32)
    up4 = up4 + bup4_ref[...]                              # (4*Cout, HW)

    # --- build the 4 parity planes of cat([up, x2]) in a zero-haloed scratch --
    # planes_ref rows [kp*Cmid : kp*Cmid+Cout] = up parity kp,
    #            rows [kp*Cmid+Cout : (kp+1)*Cmid] = x2 parity kp.
    # Halo-only zeroing (review item 5): the [OFF, OFF+HW) interior is fully
    # overwritten every step; the halos emulate the conv's zero row-padding.
    planes_ref[:, pl.ds(0, OFF)] = jnp.zeros((4 * Cmid, OFF), f32)
    planes_ref[:, pl.ds(OFF + HW, OFF)] = jnp.zeros((4 * Cmid, OFF), f32)
    for kp in range(4):
        planes_ref[pl.ds(kp * Cmid, Cout), pl.ds(OFF, HW)] = (
            up4[kp * Cout:(kp + 1) * Cout, :])
        planes_ref[pl.ds(kp * Cmid + Cout, C2), pl.ds(OFF, HW)] = (
            x2p_ref[pl.ds(kp * C2, C2), :])

    # --- stacked im2col RHS: (9*Cmid, 4*HW), masks folded at build time ------
    # For output parity (qy, qx) and conv tap (dy, dx):
    #   ay = qy+dy-1, ax = qx+dx-1  ->  source plane (ay%2, ax%2),
    #   low-res shift d = (ay//2)*W + (ax//2), column mask only when ax//2 != 0.
    # Only 16 distinct (ay, ax) source blocks exist; each is loaded/masked once
    # and stored to all (tap, parity) slots that use it.
    mask_l = mask_ref[0:1, :]                              # (1, HW): j != 0
    mask_r = mask_ref[1:2, :]                              # (1, HW): j != W-1
    for ay in (-1, 0, 1, 2):
        py, oy = ay % 2, ay // 2
        for ax in (-1, 0, 1, 2):
            px, ox = ax % 2, ax // 2
            kp = py * 2 + px
            d = oy * W + ox
            blk = planes_ref[pl.ds(kp * Cmid, Cmid), pl.ds(OFF + d, HW)]
            if ox == -1:
                blk = blk * mask_l                         # left tap wraps rows
            elif ox == 1:
                blk = blk * mask_r                         # right tap wraps rows
            for qy in (0, 1):
                dy = ay + 1 - qy
                if not 0 <= dy <= 2:
                    continue
                for qx in (0, 1):
                    dx = ax + 1 - qx
                    if not 0 <= dx <= 2:
                        continue
                    t = dy * 3 + dx
                    q = qy * 2 + qx
                    rhs_ref[pl.ds(t * Cmid, Cmid), pl.ds(q * HW, HW)] = blk

    # --- Conv2d(k=3, pad=1) + bias + ReLU: ONE matmul, K = 9*Cmid ------------
    acc = jnp.dot(wc9_ref[...], rhs_ref[...], preferred_element_type=f32)
    acc = acc + bconv_ref[...]                             # (Cout, 1) broadcast
    out_ref[...] = jnp.maximum(acc, 0.0).astype(out_ref.dtype)


# ----------------------------------------------------------------------------
# Wrapper: NCHW in, NCHW out.  Only cheap XLA layout plumbing + tiny weight
# reorders happen here (x2 parity split, output parity merge).
# ----------------------------------------------------------------------------
def decoder_unet_forward(x1_nchw, x2_nchw, params):
    N, Cin, H, W = x1_nchw.shape
    w_up, b_up = params["w_up"], params["b_up"]          # (Cin,Cout,2,2), (Cout,)
    w_conv, b_conv = params["w_conv"], params["b_conv"]  # (Cout,Cmid,3,3), (Cout,)
    Cout = w_up.shape[1]
    C2 = x2_nchw.shape[1]
    Cmid = Cout + C2
    assert Cmid == w_conv.shape[1]
    assert x2_nchw.shape == (N, C2, 2 * H, 2 * W)

    HW = H * W
    f32 = jnp.float32
    # Flat low-res halo (>= one low-res row + 1) so the 9 conv taps are plain
    # shifted slices; rounded to 128 so the interior store is lane-aligned.
    OFF = ((W + 1 + 127) // 128) * 128
    HWp = 2 * OFF + HW
    assert OFF >= W + 1

    # x1: free reshape.  x2: parity split (ki, kj) -> 4*C2 channels at low res.
    x1f = x1_nchw.reshape(N, Cin, HW).astype(f32)
    x2p = (x2_nchw.astype(f32)
           .reshape(N, C2, H, 2, W, 2)
           .transpose(0, 3, 5, 1, 2, 4)                  # (N, ki, kj, C2, H, W)
           .reshape(N, 4 * C2, HW))

    # Tiny weight-side preprocessing (all < 8 KiB, resident in VMEM).
    wup4 = jnp.transpose(w_up, (2, 3, 1, 0)).reshape(4 * Cout, Cin).astype(f32)
    wc9 = jnp.transpose(w_conv, (0, 2, 3, 1)).reshape(Cout, 9 * Cmid).astype(f32)
    bup4 = jnp.tile(b_up.astype(f32), 4).reshape(4 * Cout, 1)
    bconv2 = b_conv.reshape(Cout, 1).astype(f32)

    # Low-res column-boundary masks (folded into the 2 wrapping taps only).
    col = jnp.arange(HW, dtype=jnp.int32) % W
    masks = jnp.stack([(col != 0).astype(f32),
                       (col != W - 1).astype(f32)], axis=0)        # (2, HW)

    kernel = functools.partial(_decoder_unet_kernel, H=H, W=W, Cout=Cout,
                               C2=C2, Cmid=Cmid, OFF=OFF)

    out_flat = pl.pallas_call(
        kernel,
        out_shape=jax.ShapeDtypeStruct((N, Cout, 4 * HW), f32),
        grid_spec=pltpu.PrefetchScalarGridSpec(
            num_scalar_prefetch=0,
            grid=(N,),  # >= 2 parallel steps -> both v7x TensorCores get work
            in_specs=[
                pl.BlockSpec((None, Cin, HW), lambda n: (n, 0, 0)),     # x1
                pl.BlockSpec((None, 4 * C2, HW), lambda n: (n, 0, 0)),  # x2 par.
                pl.BlockSpec((4 * Cout, Cin), lambda n: (0, 0)),        # w_up
                pl.BlockSpec((Cout, 9 * Cmid), lambda n: (0, 0)),       # w_conv
                pl.BlockSpec((4 * Cout, 1), lambda n: (0, 0)),          # b_up
                pl.BlockSpec((Cout, 1), lambda n: (0, 0)),              # b_conv
                pl.BlockSpec((2, HW), lambda n: (0, 0)),                # col masks
            ],
            out_specs=pl.BlockSpec((None, Cout, 4 * HW), lambda n: (n, 0, 0)),
            scratch_shapes=[
                pltpu.VMEM((4 * Cmid, HWp), f32),       # 4 haloed cat planes
                pltpu.VMEM((9 * Cmid, 4 * HW), f32),    # stacked im2col RHS
            ],
        ),
        compiler_params=pltpu.CompilerParams(
            dimension_semantics=("parallel",),
        ),
    )(x1f, x2p, wup4, wc9, bup4, bconv2, masks)

    # Re-interleave the 4 output parity planes: (N, Cout, qy, qx, H, W)
    # -> (N, Cout, 2H, 2W).  Pure XLA layout plumbing on the output slab.
    out = (out_flat.reshape(N, Cout, 2, 2, H, W)
           .transpose(0, 1, 4, 2, 5, 3)
           .reshape(N, Cout, 2 * H, 2 * W))
    return out


# ----------------------------------------------------------------------------
# Pure-JAX reference (mirrors the PyTorch math directly)
# ----------------------------------------------------------------------------
def reference_forward(x1_nchw, x2_nchw, params):
    w_up, b_up = params["w_up"], params["b_up"]
    w_conv, b_conv = params["w_conv"], params["b_conv"]
    N, Cin, H, W = x1_nchw.shape
    Cout = w_up.shape[1]

    # ConvTranspose2d k=2 s=2
    up = jnp.einsum("ncij,cokl->noikjl", x1_nchw, w_up)        # (N,Cout,H,2,W,2)
    up = up.reshape(N, Cout, 2 * H, 2 * W) + b_up[None, :, None, None]

    cat = jnp.concatenate([up, x2_nchw], axis=1)               # (N,Cmid,2H,2W)
    catp = jnp.pad(cat, ((0, 0), (0, 0), (1, 1), (1, 1)))

    out = jnp.zeros((N, w_conv.shape[0], 2 * H, 2 * W), dtype=jnp.float32)
    for ki in range(3):
        for kj in range(3):
            out = out + jnp.einsum(
                "ncij,oc->noij",
                catp[:, :, ki:ki + 2 * H, kj:kj + 2 * W],
                w_conv[:, :, ki, kj],
            )
    out = out + b_conv[None, :, None, None]
    return jnp.maximum(out, 0.0)


# ----------------------------------------------------------------------------
# Deterministic parameter init (shapes from the module __init__)
# ----------------------------------------------------------------------------
def init_params(key, in_channels, middle_channels, out_channels):
    k1, k2, k3, k4 = jax.random.split(key, 4)
    w_up = jax.random.uniform(
        k1, (in_channels, out_channels, 2, 2), jnp.float32, -0.5, 0.5
    ) / jnp.sqrt(in_channels * 4.0)
    b_up = jax.random.uniform(k2, (out_channels,), jnp.float32, -0.1, 0.1)
    w_conv = jax.random.uniform(
        k3, (out_channels, middle_channels, 3, 3), jnp.float32, -0.5, 0.5
    ) / jnp.sqrt(middle_channels * 9.0)
    b_conv = jax.random.uniform(k4, (out_channels,), jnp.float32, -0.1, 0.1)
    return {"w_up": w_up, "b_up": b_up, "w_conv": w_conv, "b_conv": b_conv}


if __name__ == "__main__":
    # Shapes consistent with the module:
    #   in_channels=8, out_channels=4, x2 has 4 channels -> middle_channels=8
    in_channels, middle_channels, out_channels = 8, 8, 4
    N, H, W = 2, 8, 8

    key = jax.random.PRNGKey(0)
    kx1, kx2, kp = jax.random.split(key, 3)
    x1 = jax.random.normal(kx1, (N, in_channels, H, W), jnp.float32)
    x2 = jax.random.normal(kx2, (N, middle_channels - out_channels, 2 * H, 2 * W),
                           jnp.float32)
    params = init_params(kp, in_channels, middle_channels, out_channels)

    fwd = jax.jit(decoder_unet_forward)
    out = fwd(x1, x2, params)
    out = jax.block_until_ready(out)

    ref = reference_forward(x1, x2, params)
    assert out.shape == (N, out_channels, 2 * H, 2 * W), out.shape
    # f32 throughout; tolerance allows for MXU f32 matmul pass differences.
    assert jnp.allclose(out, ref, rtol=1e-3, atol=1e-3), (
        float(jnp.max(jnp.abs(out - ref)))
    )
    print("KERNEL_OK")
</pallas_src>

<mosaic_0001>
module attributes {stable_mosaic.version = 11 : i64} {
  func.func @_decoder_unet_kernel(%arg0: i32, %arg1: memref<1x8x64xf32, #tpu.memory_space<vmem>>, %arg2: memref<1x16x64xf32, #tpu.memory_space<vmem>>, %arg3: memref<16x8xf32, #tpu.memory_space<vmem>>, %arg4: memref<4x72xf32, #tpu.memory_space<vmem>>, %arg5: memref<16x1xf32, #tpu.memory_space<vmem>>, %arg6: memref<4x1xf32, #tpu.memory_space<vmem>>, %arg7: memref<2x64xf32, #tpu.memory_space<vmem>>, %arg8: memref<1x4x256xf32, #tpu.memory_space<vmem>>, %arg9: memref<32x320xf32, #tpu.memory_space<vmem>>, %arg10: memref<72x256xf32, #tpu.memory_space<vmem>>) attributes {dimension_semantics = [#tpu.dimension_semantics<parallel>], iteration_bounds = array<i64: 2>, scalar_prefetch = 0 : i64, scratch_operands = 2 : i64, tpu.core_type = #tpu.core_type<tc>, window_params = [{transform_indices = @transform_0, window_bounds = array<i64: 1, 8, 64>}, {transform_indices = @transform_1, window_bounds = array<i64: 1, 16, 64>}, {pipeline_mode = #tpu.pipeline_mode<synchronous>, transform_indices = @transform_2, window_bounds = array<i64: 16, 8>}, {pipeline_mode = #tpu.pipeline_mode<synchronous>, transform_indices = @transform_3, window_bounds = array<i64: 4, 72>}, {pipeline_mode = #tpu.pipeline_mode<synchronous>, transform_indices = @transform_4, window_bounds = array<i64: 16, 1>}, {pipeline_mode = #tpu.pipeline_mode<synchronous>, transform_indices = @transform_5, window_bounds = array<i64: 4, 1>}, {pipeline_mode = #tpu.pipeline_mode<synchronous>, transform_indices = @transform_6, window_bounds = array<i64: 2, 64>}, {transform_indices = @transform_7, window_bounds = array<i64: 1, 4, 256>}]} {
    %c0 = arith.constant 0 : index
    %c0_0 = arith.constant 0 : index
    %0 = vector.load %arg3[%c0, %c0_0] : memref<16x8xf32, #tpu.memory_space<vmem>>, vector<16x8xf32>
    %c0_1 = arith.constant 0 : index
    %c0_2 = arith.constant 0 : index
    %c0_3 = arith.constant 0 : index
    %1 = vector.load %arg1[%c0_1, %c0_2, %c0_3] : memref<1x8x64xf32, #tpu.memory_space<vmem>>, vector<1x8x64xf32>
    %2 = vector.shape_cast %1 : vector<1x8x64xf32> to vector<8x64xf32>
    %cst = arith.constant dense<0.000000e+00> : vector<16x64xf32>
    %3 = tpu.matmul %0, %2, %cst {dimension_numbers = #tpu.dot_dimension_numbers<[1], [0], [0], [1], [0, 0, 1, 1], [], []>} : vector<16x8xf32>, vector<8x64xf32>, vector<16x64xf32> -> vector<16x64xf32>
    %c0_4 = arith.constant 0 : index
    %c0_5 = arith.constant 0 : index
    %4 = vector.load %arg5[%c0_4, %c0_5] : memref<16x1xf32, #tpu.memory_space<vmem>>, vector<16x1xf32>
    %5 = vector.broadcast %4 : vector<16x1xf32> to vector<16x64xf32>
    %6 = arith.addf %3, %5 : vector<16x64xf32>
    %cst_6 = arith.constant 0.000000e+00 : f32
    %7 = vector.broadcast %cst_6 : f32 to vector<32x128xf32>
    %c0_7 = arith.constant 0 : index
    %c0_8 = arith.constant 0 : index
    %8 = vector.load %arg9[%c0_7, %c0_8] : memref<32x320xf32, #tpu.memory_space<vmem>>, vector<32x128xf32>
    tpu.vector_store %arg9[%c0_7, %c0_8], %7 {strides = array<i32>} : memref<32x320xf32, #tpu.memory_space<vmem>>, vector<32x128xf32>,
    %cst_9 = arith.constant 0.000000e+00 : f32
    %9 = vector.broadcast %cst_9 : f32 to vector<32x128xf32>
    %c0_10 = arith.constant 0 : index
    %c192 = arith.constant 192 : index
    %10 = vector.load %arg9[%c0_10, %c192] : memref<32x320xf32, #tpu.memory_space<vmem>>, vector<32x128xf32>
    tpu.vector_store %arg9[%c0_10, %c192], %9 {strides = array<i32>} : memref<32x320xf32, #tpu.memory_space<vmem>>, vector<32x128xf32>,
    %11 = vector.extract_strided_slice %6 {offsets = [0, 0], sizes = [4, 64], strides = [1, 1]} : vector<16x64xf32> to vector<4x64xf32>
    %c0_11 = arith.constant 0 : index
    %c128 = arith.constant 128 : index
    %12 = vector.load %arg9[%c0_11, %c128] : memref<32x320xf32, #tpu.memory_space<vmem>>, vector<4x64xf32>
    tpu.vector_store %arg9[%c0_11, %c128], %11 {strides = array<i32>} : memref<32x320xf32, #tpu.memory_space<vmem>>, vector<4x64xf32>,
    %c0_12 = arith.constant 0 : index
    %c0_13 = arith.constant 0 : index
    %c0_14 = arith.constant 0 : index
    %13 = vector.load %arg2[%c0_12, %c0_13, %c0_14] : memref<1x16x64xf32, #tpu.memory_space<vmem>>, vector<1x4x64xf32>
    %14 = vector.shape_cast %13 : vector<1x4x64xf32> to vector<4x64xf32>
    %c4 = arith.constant 4 : index
    %c128_15 = arith.constant 128 : index
    %15 = vector.load %arg9[%c4, %c128_15] : memref<32x320xf32, #tpu.memory_space<vmem>>, vector<4x64xf32>
    tpu.vector_store %arg9[%c4, %c128_15], %14 {strides = array<i32>} : memref<32x320xf32, #tpu.memory_space<vmem>>, vector<4x64xf32>,
    %16 = vector.extract_strided_slice %6 {offsets = [4, 0], sizes = [4, 64], strides = [1, 1]} : vector<16x64xf32> to vector<4x64xf32>
    %c8 = arith.constant 8 : index
    %c128_16 = arith.constant 128 : index
    %17 = vector.load %arg9[%c8, %c128_16] : memref<32x320xf32, #tpu.memory_space<vmem>>, vector<4x64xf32>
    tpu.vector_store %arg9[%c8, %c128_16], %16 {strides = array<i32>} : memref<32x320xf32, #tpu.memory_space<vmem>>, vector<4x64xf32>,
    %c0_17 = arith.constant 0 : index
    %c4_18 = arith.constant 4 : index
    %c0_19 = arith.constant 0 : index
    %18 = vector.load %arg2[%c0_17, %c4_18, %c0_19] : memref<1x16x64xf32, #tpu.memory_space<vmem>>, vector<1x4x64xf32>
    %19 = vector.shape_cast %18 : vector<1x4x64xf32> to vector<4x64xf32>
    %c12 = arith.constant 12 : index
    %c128_20 = arith.constant 128 : index
    %20 = vector.load %arg9[%c12, %c128_20] : memref<32x320xf32, #tpu.memory_space<vmem>>, vector<4x64xf32>
    tpu.vector_store %arg9[%c12, %c128_20], %19 {strides = array<i32>} : memref<32x320xf32, #tpu.memory_space<vmem>>, vector<4x64xf32>,
    %21 = vector.extract_strided_slice %6 {offsets = [8, 0], sizes = [4, 64], strides = [1, 1]} : vector<16x64xf32> to vector<4x64xf32>
    %c16 = arith.constant 16 : index
    %c128_21 = arith.constant 128 : index
    %22 = vector.load %arg9[%c16, %c128_21] : memref<32x320xf32, #tpu.memory_space<vmem>>, vector<4x64xf32>
    tpu.vector_store %arg9[%c16, %c128_21], %21 {strides = array<i32>} : memref<32x320xf32, #tpu.memory_space<vmem>>, vector<4x64xf32>,
    %c0_22 = arith.constant 0 : index
    %c8_23 = arith.constant 8 : index
    %c0_24 = arith.constant 0 : index
    %23 = vector.load %arg2[%c0_22, %c8_23, %c0_24] : memref<1x16x64xf32, #tpu.memory_space<vmem>>, vector<1x4x64xf32>
    %24 = vector.shape_cast %23 : vector<1x4x64xf32> to vector<4x64xf32>
    %c20 = arith.constant 20 : index
    %c128_25 = arith.constant 128 : index
    %25 = vector.load %arg9[%c20, %c128_25] : memref<32x320xf32, #tpu.memory_space<vmem>>, vector<4x64xf32>
    tpu.vector_store %arg9[%c20, %c128_25], %24 {strides = array<i32>} : memref<32x320xf32, #tpu.memory_space<vmem>>, vector<4x64xf32>,
    %26 = vector.extract_strided_slice %6 {offsets = [12, 0], sizes = [4, 64], strides = [1, 1]} : vector<16x64xf32> to vector<4x64xf32>
    %c24 = arith.constant 24 : index
    %c128_26 = arith.constant 128 : index
    %27 = vector.load %arg9[%c24, %c128_26] : memref<32x320xf32, #tpu.memory_space<vmem>>, vector<4x64xf32>
    tpu.vector_store %arg9[%c24, %c128_26], %26 {strides = array<i32>} : memref<32x320xf32, #tpu.memory_space<vmem>>, vector<4x64xf32>,
    %c0_27 = arith.constant 0 : index
    %c12_28 = arith.constant 12 : index
    %c0_29 = arith.constant 0 : index
    %28 = vector.load %arg2[%c0_27, %c12_28, %c0_29] : memref<1x16x64xf32, #tpu.memory_space<vmem>>, vector<1x4x64xf32>
    %29 = vector.shape_cast %28 : vector<1x4x64xf32> to vector<4x64xf32>
    %c28 = arith.constant 28 : index
    %c128_30 = arith.constant 128 : index
    %30 = vector.load %arg9[%c28, %c128_30] : memref<32x320xf32, #tpu.memory_space<vmem>>, vector<4x64xf32>
    tpu.vector_store %arg9[%c28, %c128_30], %29 {strides = array<i32>} : memref<32x320xf32, #tpu.memory_space<vmem>>, vector<4x64xf32>,
    %c0_31 = arith.constant 0 : index
    %c0_32 = arith.constant 0 : index
    %31 = vector.load %arg7[%c0_31, %c0_32] : memref<2x64xf32, #tpu.memory_space<vmem>>, vector<1x64xf32>
    %c1 = arith.constant 1 : index
    %c0_33 = arith.constant 0 : index
    %32 = vector.load %arg7[%c1, %c0_33] : memref<2x64xf32, #tpu.memory_space<vmem>>, vector<1x64xf32>
    %c24_34 = arith.constant 24 : index
    %c119 = arith.constant 119 : index
    %33 = vector.load %arg9[%c24_34, %c119] : memref<32x320xf32, #tpu.memory_space<vmem>>, vector<8x64xf32>
    %34 = vector.broadcast %31 : vector<1x64xf32> to vector<8x64xf32>
    %35 = arith.mulf %33, %34 : vector<8x64xf32>
    %c0_35 = arith.constant 0 : index
    %c0_36 = arith.constant 0 : index
    %36 = vector.load %arg10[%c0_35, %c0_36] : memref<72x256xf32, #tpu.memory_space<vmem>>, vector<8x64xf32>
    tpu.vector_store %arg10[%c0_35, %c0_36], %35 {strides = array<i32>} : memref<72x256xf32, #tpu.memory_space<vmem>>, vector<8x64xf32>,
    %c16_37 = arith.constant 16 : index
    %c120 = arith.constant 120 : index
    %37 = vector.load %arg9[%c16_37, %c120] : memref<32x320xf32, #tpu.memory_space<vmem>>, vector<8x64xf32>
    %c8_38 = arith.constant 8 : index
    %c0_39 = arith.constant 0 : index
    %38 = vector.load %arg10[%c8_38, %c0_39] : memref<72x256xf32, #tpu.memory_space<vmem>>, vector<8x64xf32>
    tpu.vector_store %arg10[%c8_38, %c0_39], %37 {strides = array<i32>} : memref<72x256xf32, #tpu.memory_space<vmem>>, vector<8x64xf32>,
    %c0_40 = arith.constant 0 : index
    %c64 = arith.constant 64 : index
    %39 = vector.load %arg10[%c0_40, %c64] : memref<72x256xf32, #tpu.memory_space<vmem>>, vector<8x64xf32>
    tpu.vector_store %arg10[%c0_40, %c64], %37 {strides = array<i32>} : memref<72x256xf32, #tpu.memory_space<vmem>>, vector<8x64xf32>,
    %c24_41 = arith.constant 24 : index
    %c120_42 = arith.constant 120 : index
    %40 = vector.load %arg9[%c24_41, %c120_42] : memref<32x320xf32, #tpu.memory_space<vmem>>, vector<8x64xf32>
    %c16_43 = arith.constant 16 : index
    %c0_44 = arith.constant 0 : index
    %41 = vector.load %arg10[%c16_43, %c0_44] : memref<72x256xf32, #tpu.memory_space<vmem>>, vector<8x64xf32>
    tpu.vector_store %arg10[%c16_43, %c0_44], %40 {strides = array<i32>} : memref<72x256xf32, #tpu.memory_space<vmem>>, vector<8x64xf32>,
    %c8_45 = arith.constant 8 : index
    %c64_46 = arith.constant 64 : index
    %42 = vector.load %arg10[%c8_45, %c64_46] : memref<72x256xf32, #tpu.memory_space<vmem>>, vector<8x64xf32>
    tpu.vector_store %arg10[%c8_45, %c64_46], %40 {strides = array<i32>} : memref<72x256xf32, #tpu.memory_space<vmem>>, vector<8x64xf32>,
    %c16_47 = arith.constant 16 : index
    %c121 = arith.constant 121 : index
    %43 = vector.load %arg9[%c16_47, %c121] : memref<32x320xf32, #tpu.memory_space<vmem>>, vector<8x64xf32>
    %44 = vector.broadcast %32 : vector<1x64xf32> to vector<8x64xf32>
    %45 = arith.mulf %43, %44 : vector<8x64xf32>
    %c16_48 = arith.constant 16 : index
    %c64_49 = arith.constant 64 : index
    %46 = vector.load %arg10[%c16_48, %c64_49] : memref<72x256xf32, #tpu.memory_space<vmem>>, vector<8x64xf32>
    tpu.vector_store %arg10[%c16_48, %c64_49], %45 {strides = array<i32>} : memref<72x256xf32, #tpu.memory_space<vmem>>, vector<8x64xf32>,
    %c8_50 = arith.constant 8 : index
    %c127 = arith.constant 127 : index
    %47 = vector.load %arg9[%c8_50, %c127] : memref<32x320xf32, #tpu.memory_space<vmem>>, vector<8x64xf32>
    %48 = vector.broadcast %31 : vector<1x64xf32> to vector<8x64xf32>
    %49 = arith.mulf %47, %48 : vector<8x64xf32>
    %c24_51 = arith.constant 24 : index
    %c0_52 = arith.constant 0 : index
    %50 = vector.load %arg10[%c24_51, %c0_52] : memref<72x256xf32, #tpu.memory_space<vmem>>, vector<8x64xf32>
    tpu.vector_store %arg10[%c24_51, %c0_52], %49 {strides = array<i32>} : memref<72x256xf32, #tpu.memory_space<vmem>>, vector<8x64xf32>,
    %c0_53 = arith.constant 0 : index
    %c128_54 = arith.constant 128 : index
    %51 = vector.load %arg10[%c0_53, %c128_54] : memref<72x256xf32, #tpu.memory_space<vmem>>, vector<8x64xf32>
    tpu.vector_store %arg10[%c0_53, %c128_54], %49 {strides = array<i32>} : memref<72x256xf32, #tpu.memory_space<vmem>>, vector<8x64xf32>,
    %c0_55 = arith.constant 0 : index
    %c128_56 = arith.constant 128 : index
    %52 = vector.load %arg9[%c0_55, %c128_56] : memref<32x320xf32, #tpu.memory_space<vmem>>, vector<8x64xf32>
    %c32 = arith.constant 32 : index
    %c0_57 = arith.constant 0 : index
    %53 = vector.load %arg10[%c32, %c0_57] : memref<72x256xf32, #tpu.memory_space<vmem>>, vector<8x64xf32>
    tpu.vector_store %arg10[%c32, %c0_57], %52 {strides = array<i32>} : memref<72x256xf32, #tpu.memory_space<vmem>>, vector<8x64xf32>,
    %c24_58 = arith.constant 24 : index
    %c64_59 = arith.constant 64 : index
    %54 = vector.load %arg10[%c24_58, %c64_59] : memref<72x256xf32, #tpu.memory_space<vmem>>, vector<8x64xf32>
    tpu.vector_store %arg10[%c24_58, %c64_59], %52 {strides = array<i32>} : memref<72x256xf32, #tpu.memory_space<vmem>>, vector<8x64xf32>,
    %c8_60 = arith.constant 8 : index
    %c128_61 = arith.constant 128 : index
    %55 = vector.load %arg10[%c8_60, %c128_61] : memref<72x256xf32, #tpu.memory_space<vmem>>, vector<8x64xf32>
    tpu.vector_store %arg10[%c8_60, %c128_61], %52 {strides = array<i32>} : memref<72x256xf32, #tpu.memory_space<vmem>>, vector<8x64xf32>,
    %c0_62 = arith.constant 0 : index
    %c192_63 = arith.constant 192 : index
    %56 = vector.load %arg10[%c0_62, %c192_63] : memref<72x256xf32, #tpu.memory_space<vmem>>, vector<8x64xf32>
    tpu.vector_store %arg10[%c0_62, %c192_63], %52 {strides = array<i32>} : memref<72x256xf32, #tpu.memory_space<vmem>>, vector<8x64xf32>,
    %c8_64 = arith.constant 8 : index
    %c128_65 = arith.constant 128 : index
    %57 = vector.load %arg9[%c8_64, %c128_65] : memref<32x320xf32, #tpu.memory_space<vmem>>, vector<8x64xf32>
    %c40 = arith.constant 40 : index
    %c0_66 = arith.constant 0 : index
    %58 = vector.load %arg10[%c40, %c0_66] : memref<72x256xf32, #tpu.memory_space<vmem>>, vector<8x64xf32>
    tpu.vector_store %arg10[%c40, %c0_66], %57 {strides = array<i32>} : memref<72x256xf32, #tpu.memory_space<vmem>>, vector<8x64xf32>,
    %c32_67 = arith.constant 32 : index
    %c64_68 = arith.constant 64 : index
    %59 = vector.load %arg10[%c32_67, %c64_68] : memref<72x256xf32, #tpu.memory_space<vmem>>, vector<8x64xf32>
    tpu.vector_store %arg10[%c32_67, %c64_68], %57 {strides = array<i32>} : memref<72x256xf32, #tpu.memory_space<vmem>>, vector<8x64xf32>,
    %c16_69 = arith.constant 16 : index
    %c128_70 = arith.constant 128 : index
    %60 = vector.load %arg10[%c16_69, %c128_70] : memref<72x256xf32, #tpu.memory_space<vmem>>, vector<8x64xf32>
    tpu.vector_store %arg10[%c16_69, %c128_70], %57 {strides = array<i32>} : memref<72x256xf32, #tpu.memory_space<vmem>>, vector<8x64xf32>,
    %c8_71 = arith.constant 8 : index
    %c192_72 = arith.constant 192 : index
    %61 = vector.load %arg10[%c8_71, %c192_72] : memref<72x256xf32, #tpu.memory_space<vmem>>, vector<8x64xf32>
    tpu.vector_store %arg10[%c8_71, %c192_72], %57 {strides = array<i32>} : memref<72x256xf32, #tpu.memory_space<vmem>>, vector<8x64xf32>,
    %c0_73 = arith.constant 0 : index
    %c129 = arith.constant 129 : index
    %62 = vector.load %arg9[%c0_73, %c129] : memref<32x320xf32, #tpu.memory_space<vmem>>, vector<8x64xf32>
    %63 = vector.broadcast %32 : vector<1x64xf32> to vector<8x64xf32>
    %64 = arith.mulf %62, %63 : vector<8x64xf32>
    %c40_74 = arith.constant 40 : index
    %c64_75 = arith.constant 64 : index
    %65 = vector.load %arg10[%c40_74, %c64_75] : memref<72x256xf32, #tpu.memory_space<vmem>>, vector<8x64xf32>
    tpu.vector_store %arg10[%c40_74, %c64_75], %64 {strides = array<i32>} : memref<72x256xf32, #tpu.memory_space<vmem>>, vector<8x64xf32>,
    %c16_76 = arith.constant 16 : index
    %c192_77 = arith.constant 192 : index
    %66 = vector.load %arg10[%c16_76, %c192_77] : memref<72x256xf32, #tpu.memory_space<vmem>>, vector<8x64xf32>
    tpu.vector_store %arg10[%c16_76, %c192_77], %64 {strides = array<i32>} : memref<72x256xf32, #tpu.memory_space<vmem>>, vector<8x64xf32>,
    %c24_78 = arith.constant 24 : index
    %c127_79 = arith.constant 127 : index
    %67 = vector.load %arg9[%c24_78, %c127_79] : memref<32x320xf32, #tpu.memory_space<vmem>>, vector<8x64xf32>
    %68 = vector.broadcast %31 : vector<1x64xf32> to vector<8x64xf32>
    %69 = arith.mulf %67, %68 : vector<8x64xf32>
    %c48 = arith.constant 48 : index
    %c0_80 = arith.constant 0 : index
    %70 = vector.load %arg10[%c48, %c0_80] : memref<72x256xf32, #tpu.memory_space<vmem>>, vector<8x64xf32>
    tpu.vector_store %arg10[%c48, %c0_80], %69 {strides = array<i32>} : memref<72x256xf32, #tpu.memory_space<vmem>>, vector<8x64xf32>,
    %c24_81 = arith.constant 24 : index
    %c128_82 = arith.constant 128 : index
    %71 = vector.load %arg10[%c24_81, %c128_82] : memref<72x256xf32, #tpu.memory_space<vmem>>, vector<8x64xf32>
    tpu.vector_store %arg10[%c24_81, %c128_82], %69 {strides = array<i32>} : memref<72x256xf32, #tpu.memory_space<vmem>>, vector<8x64xf32>,
    %c16_83 = arith.constant 16 : index
    %c128_84 = arith.constant 128 : index
    %72 = vector.load %arg9[%c16_83, %c128_84] : memref<32x320xf32, #tpu.memory_space<vmem>>, vector<8x64xf32>
    %c56 = arith.constant 56 : index
    %c0_85 = arith.constant 0 : index
    %73 = vector.load %arg10[%c56, %c0_85] : memref<72x256xf32, #tpu.memory_space<vmem>>, vector<8x64xf32>
    tpu.vector_store %arg10[%c56, %c0_85], %72 {strides = array<i32>} : memref<72x256xf32, #tpu.memory_space<vmem>>, vector<8x64xf32>,
    %c48_86 = arith.constant 48 : index
    %c64_87 = arith.constant 64 : index
    %74 = vector.load %arg10[%c48_86, %c64_87] : memref<72x256xf32, #tpu.memory_space<vmem>>, vector<8x64xf32>
    tpu.vector_store %arg10[%c48_86, %c64_87], %72 {strides = array<i32>} : memref<72x256xf32, #tpu.memory_space<vmem>>, vector<8x64xf32>,
    %c32_88 = arith.constant 32 : index
    %c128_89 = arith.constant 128 : index
    %75 = vector.load %arg10[%c32_88, %c128_89] : memref<72x256xf32, #tpu.memory_space<vmem>>, vector<8x64xf32>
    tpu.vector_store %arg10[%c32_88, %c128_89], %72 {strides = array<i32>} : memref<72x256xf32, #tpu.memory_space<vmem>>, vector<8x64xf32>,
    %c24_90 = arith.constant 24 : index
    %c192_91 = arith.constant 192 : index
    %76 = vector.load %arg10[%c24_90, %c192_91] : memref<72x256xf32, #tpu.memory_space<vmem>>, vector<8x64xf32>
    tpu.vector_store %arg10[%c24_90, %c192_91], %72 {strides = array<i32>} : memref<72x256xf32, #tpu.memory_space<vmem>>, vector<8x64xf32>,
    %c24_92 = arith.constant 24 : index
    %c128_93 = arith.constant 128 : index
    %77 = vector.load %arg9[%c24_92, %c128_93] : memref<32x320xf32, #tpu.memory_space<vmem>>, vector<8x64xf32>
    %c64_94 = arith.constant 64 : index
    %c0_95 = arith.constant 0 : index
    %78 = vector.load %arg10[%c64_94, %c0_95] : memref<72x256xf32, #tpu.memory_space<vmem>>, vector<8x64xf32>
    tpu.vector_store %arg10[%c64_94, %c0_95], %77 {strides = array<i32>} : memref<72x256xf32, #tpu.memory_space<vmem>>, vector<8x64xf32>,
    %c56_96 = arith.constant 56 : index
    %c64_97 = arith.constant 64 : index
    %79 = vector.load %arg10[%c56_96, %c64_97] : memref<72x256xf32, #tpu.memory_space<vmem>>, vector<8x64xf32>
    tpu.vector_store %arg10[%c56_96, %c64_97], %77 {strides = array<i32>} : memref<72x256xf32, #tpu.memory_space<vmem>>, vector<8x64xf32>,
    %c40_98 = arith.constant 40 : index
    %c128_99 = arith.constant 128 : index
    %80 = vector.load %arg10[%c40_98, %c128_99] : memref<72x256xf32, #tpu.memory_space<vmem>>, vector<8x64xf32>
    tpu.vector_store %arg10[%c40_98, %c128_99], %77 {strides = array<i32>} : memref<72x256xf32, #tpu.memory_space<vmem>>, vector<8x64xf32>,
    %c32_100 = arith.constant 32 : index
    %c192_101 = arith.constant 192 : index
    %81 = vector.load %arg10[%c32_100, %c192_101] : memref<72x256xf32, #tpu.memory_space<vmem>>, vector<8x64xf32>
    tpu.vector_store %arg10[%c32_100, %c192_101], %77 {strides = array<i32>} : memref<72x256xf32, #tpu.memory_space<vmem>>, vector<8x64xf32>,
    %c16_102 = arith.constant 16 : index
    %c129_103 = arith.constant 129 : index
    %82 = vector.load %arg9[%c16_102, %c129_103] : memref<32x320xf32, #tpu.memory_space<vmem>>, vector<8x64xf32>
    %83 = vector.broadcast %32 : vector<1x64xf32> to vector<8x64xf32>
    %84 = arith.mulf %82, %83 : vector<8x64xf32>
    %c64_104 = arith.constant 64 : index
    %c64_105 = arith.constant 64 : index
    %85 = vector.load %arg10[%c64_104, %c64_105] : memref<72x256xf32, #tpu.memory_space<vmem>>, vector<8x64xf32>
    tpu.vector_store %arg10[%c64_104, %c64_105], %84 {strides = array<i32>} : memref<72x256xf32, #tpu.memory_space<vmem>>, vector<8x64xf32>,
    %c40_106 = arith.constant 40 : index
    %c192_107 = arith.constant 192 : index
    %86 = vector.load %arg10[%c40_106, %c192_107] : memref<72x256xf32, #tpu.memory_space<vmem>>, vector<8x64xf32>
    tpu.vector_store %arg10[%c40_106, %c192_107], %84 {strides = array<i32>} : memref<72x256xf32, #tpu.memory_space<vmem>>, vector<8x64xf32>,
    %c8_108 = arith.constant 8 : index
    %c135 = arith.constant 135 : index
    %87 = vector.load %arg9[%c8_108, %c135] : memref<32x320xf32, #tpu.memory_space<vmem>>, vector<8x64xf32>
    %88 = vector.broadcast %31 : vector<1x64xf32> to vector<8x64xf32>
    %89 = arith.mulf %87, %88 : vector<8x64xf32>
    %c48_109 = arith.constant 48 : index
    %c128_110 = arith.constant 128 : index
    %90 = vector.load %arg10[%c48_109, %c128_110] : memref<72x256xf32, #tpu.memory_space<vmem>>, vector<8x64xf32>
    tpu.vector_store %arg10[%c48_109, %c128_110], %89 {strides = array<i32>} : memref<72x256xf32, #tpu.memory_space<vmem>>, vector<8x64xf32>,
    %c0_111 = arith.constant 0 : index
    %c136 = arith.constant 136 : index
    %91 = vector.load %arg9[%c0_111, %c136] : memref<32x320xf32, #tpu.memory_space<vmem>>, vector<8x64xf32>
    %c56_112 = arith.constant 56 : index
    %c128_113 = arith.constant 128 : index
    %92 = vector.load %arg10[%c56_112, %c128_113] : memref<72x256xf32, #tpu.memory_space<vmem>>, vector<8x64xf32>
    tpu.vector_store %arg10[%c56_112, %c128_113], %91 {strides = array<i32>} : memref<72x256xf32, #tpu.memory_space<vmem>>, vector<8x64xf32>,
    %c48_114 = arith.constant 48 : index
    %c192_115 = arith.constant 192 : index
    %93 = vector.load %arg10[%c48_114, %c192_115] : memref<72x256xf32, #tpu.memory_space<vmem>>, vector<8x64xf32>
    tpu.vector_store %arg10[%c48_114, %c192_115], %91 {strides = array<i32>} : memref<72x256xf32, #tpu.memory_space<vmem>>, vector<8x64xf32>,
    %c8_116 = arith.constant 8 : index
    %c136_117 = arith.constant 136 : index
    %94 = vector.load %arg9[%c8_116, %c136_117] : memref<32x320xf32, #tpu.memory_space<vmem>>, vector<8x64xf32>
    %c64_118 = arith.constant 64 : index
    %c128_119 = arith.constant 128 : index
    %95 = vector.load %arg10[%c64_118, %c128_119] : memref<72x256xf32, #tpu.memory_space<vmem>>, vector<8x64xf32>
    tpu.vector_store %arg10[%c64_118, %c128_119], %94 {strides = array<i32>} : memref<72x256xf32, #tpu.memory_space<vmem>>, vector<8x64xf32>,
    %c56_120 = arith.constant 56 : index
    %c192_121 = arith.constant 192 : index
    %96 = vector.load %arg10[%c56_120, %c192_121] : memref<72x256xf32, #tpu.memory_space<vmem>>, vector<8x64xf32>
    tpu.vector_store %arg10[%c56_120, %c192_121], %94 {strides = array<i32>} : memref<72x256xf32, #tpu.memory_space<vmem>>, vector<8x64xf32>,
    %c0_122 = arith.constant 0 : index
    %c137 = arith.constant 137 : index
    %97 = vector.load %arg9[%c0_122, %c137] : memref<32x320xf32, #tpu.memory_space<vmem>>, vector<8x64xf32>
    %98 = vector.broadcast %32 : vector<1x64xf32> to vector<8x64xf32>
    %99 = arith.mulf %97, %98 : vector<8x64xf32>
    %c64_123 = arith.constant 64 : index
    %c192_124 = arith.constant 192 : index
    %100 = vector.load %arg10[%c64_123, %c192_124] : memref<72x256xf32, #tpu.memory_space<vmem>>, vector<8x64xf32>
    tpu.vector_store %arg10[%c64_123, %c192_124], %99 {strides = array<i32>} : memref<72x256xf32, #tpu.memory_space<vmem>>, vector<8x64xf32>,
    %c0_125 = arith.constant 0 : index
    %c0_126 = arith.constant 0 : index
    %101 = vector.load %arg4[%c0_125, %c0_126] : memref<4x72xf32, #tpu.memory_space<vmem>>, vector<4x72xf32>
    %c0_127 = arith.constant 0 : index
    %c0_128 = arith.constant 0 : index
    %102 = vector.load %arg10[%c0_127, %c0_128] : memref<72x256xf32, #tpu.memory_space<vmem>>, vector<72x256xf32>
    %cst_129 = arith.constant dense<0.000000e+00> : vector<4x256xf32>
    %103 = tpu.matmul %101, %102, %cst_129 {dimension_numbers = #tpu.dot_dimension_numbers<[1], [0], [0], [1], [0, 0, 1, 1], [], []>} : vector<4x72xf32>, vector<72x256xf32>, vector<4x256xf32> -> vector<4x256xf32>
    %c0_130 = arith.constant 0 : index
    %c0_131 = arith.constant 0 : index
    %104 = vector.load %arg6[%c0_130, %c0_131] : memref<4x1xf32, #tpu.memory_space<vmem>>, vector<4x1xf32>
    %105 = vector.broadcast %104 : vector<4x1xf32> to vector<4x256xf32>
    %106 = arith.addf %103, %105 : vector<4x256xf32>
    %cst_132 = arith.constant 0.000000e+00 : f32
    %107 = vector.broadcast %cst_132 : f32 to vector<4x256xf32>
    %108 = arith.maximumf %106, %107 : vector<4x256xf32>
    %c0_133 = arith.constant 0 : index
    %c0_134 = arith.constant 0 : index
    %c0_135 = arith.constant 0 : index
    %109 = vector.load %arg8[%c0_133, %c0_134, %c0_135] : memref<1x4x256xf32, #tpu.memory_space<vmem>>, vector<1x4x256xf32>
    %110 = vector.shape_cast %109 : vector<1x4x256xf32> to vector<4x256xf32>
    %111 = vector.shape_cast %108 : vector<4x256xf32> to vector<1x4x256xf32>
    tpu.vector_store %arg8[%c0_133, %c0_134, %c0_135], %111 {strides = array<i32>} : memref<1x4x256xf32, #tpu.memory_space<vmem>>, vector<1x4x256xf32>,
    return
  }
  func.func @transform_0(%arg0: i32) -> (i32, i32, i32) {
    %c0_i32 = arith.constant 0 : i32
    %c0_i32_0 = arith.constant 0 : i32
    %c0_i32_1 = arith.constant 0 : i32
    return %arg0, %c0_i32, %c0_i32_0 : i32, i32, i32
  }
  func.func @transform_1(%arg0: i32) -> (i32, i32, i32) {
    %c0_i32 = arith.constant 0 : i32
    %c0_i32_0 = arith.constant 0 : i32
    %c0_i32_1 = arith.constant 0 : i32
    return %arg0, %c0_i32, %c0_i32_0 : i32, i32, i32
  }
  func.func @transform_2(%arg0: i32) -> (i32, i32) {
    %c0_i32 = arith.constant 0 : i32
    %c0_i32_0 = arith.constant 0 : i32
    %c0_i32_1 = arith.constant 0 : i32
    return %c0_i32, %c0_i32_0 : i32, i32
  }
  func.func @transform_3(%arg0: i32) -> (i32, i32) {
    %c0_i32 = arith.constant 0 : i32
    %c0_i32_0 = arith.constant 0 : i32
    %c0_i32_1 = arith.constant 0 : i32
    return %c0_i32, %c0_i32_0 : i32, i32
  }
  func.func @transform_4(%arg0: i32) -> (i32, i32) {
    %c0_i32 = arith.constant 0 : i32
    %c0_i32_0 = arith.constant 0 : i32
    %c0_i32_1 = arith.constant 0 : i32
    return %c0_i32, %c0_i32_0 : i32, i32
  }
  func.func @transform_5(%arg0: i32) -> (i32, i32) {
    %c0_i32 = arith.constant 0 : i32
    %c0_i32_0 = arith.constant 0 : i32
    %c0_i32_1 = arith.constant 0 : i32
    return %c0_i32, %c0_i32_0 : i32, i32
  }
  func.func @transform_6(%arg0: i32) -> (i32, i32) {
    %c0_i32 = arith.constant 0 : i32
    %c0_i32_0 = arith.constant 0 : i32
    %c0_i32_1 = arith.constant 0 : i32
    return %c0_i32, %c0_i32_0 : i32, i32
  }
  func.func @transform_7(%arg0: i32) -> (i32, i32, i32) {
    %c0_i32 = arith.constant 0 : i32
    %c0_i32_0 = arith.constant 0 : i32
    %c0_i32_1 = arith.constant 0 : i32
    return %arg0, %c0_i32, %c0_i32_0 : i32, i32, i32
  }
}

</mosaic_0001>

<bundles_post_ra>
// kernel: tile.8
= control target key start
LH: loop header
LB: loop body
LE: loop exit
PB: predicated region body
PF: predicated region fallthrough
CT: control target
= control target key end

     0   :  { %s22_s0 = inlined_call_operand.vmem [shape: f32[4], index: 0, kind: input, shape index: {}]   ;;  %s23_s1 = inlined_call_operand.vmem [shape: f32[4,4], index: 1, kind: output, shape index: {}]  }
   0x1   :  { %v4_v0 = vld [vmem:[%s22_s0] ss:$0 sm:$0xff] }
   0x2   :  { %5 = vst [vmem:[%s23_s1] sm:$0xf] %v4_v0 }

// kernel: tile.0
= control target key start
LH: loop header
LB: loop body
LE: loop exit
PB: predicated region body
PF: predicated region fallthrough
CT: control target
= control target key end

     0   :  { %s34_s8 = smov 125   ;;  %vm7_vm0 = vcmask 7168   ;;  %s35_s11 = smov 126   ;;  %s61_s0 = inlined_call_operand.vmem [shape: f32[4,4], index: 0, kind: input, shape index: {}]   ;;  %s62_s1 = inlined_call_operand.vmem [shape: f32[16,1], index: 1, kind: output, shape index: {}]  }
   0x1   :  { %v4_v0 = vld [vmem:[%s61_s0] sm:$0xf]  ;;  %s33_s0 = smov 127  }
   0x2   :  { %5 = vst [vmem:[#allocation0] sm:$0xf] %v4_v0 }
   0x9   :  { %v9_v1 = vld [vmem:[#allocation0] sm:$0xf]  }
   0xa   :  { %v21_v2 = vld [vmem:[#allocation0] sm:$0xf]   ;;  %10 = vrot.lane.b32.xlu0 %v9_v1, %s33_s0 }
   0xb   :  { %22 = vrot.lane.b32.xlu1 %v21_v2, %s34_s8  ;;  %v6_v3 = vld [vmem:[#allocation0] sm:$0xf]  }
   0xc   :  { %v15_v4 = vld [vmem:[#allocation0] sm:$0xf]   ;;  %8 = vst.msk [vmem:[%s62_s1] ss:$4 sm:$0xf] %vm7_vm0, %v6_v3  }
   0xe   :  { %16 = vrot.lane.b32.xlu0 %v15_v4, %s35_s11 }
  0x7c   :  { %v11_v5 = vpop.permute.xlu0 %10  }
  0x7d   :  { %v23_v6 = vpop.permute.xlu1 %22   ;;  %27 = vst.msk [vmem:[%s62_s1 + $0x1] ss:$4 sm:$0xf] %vm7_vm0, %v11_v5  }
  0x7e   :  { %29 = vst.msk [vmem:[%s62_s1 + $0x3] ss:$4 sm:$0xf] %vm7_vm0, %v23_v6  }
  0x80   :  { %v17_v7 = vpop.permute.xlu0 %16  }
  0x81   :  { %28 = vst.msk [vmem:[%s62_s1 + $0x2] ss:$4 sm:$0xf] %vm7_vm0, %v17_v7  }

// kernel: decoder_unet_forward.1
= control target key start
LH: loop header
LB: loop body
LE: loop exit
PB: predicated region body
PF: predicated region fallthrough
CT: control target
= control target key end

     0   :  { %s964_s24 = smov 0   ;;  %s1083_s0 = inlined_call_operand.vmem [shape: f32[2,8,64], index: 0, kind: input, shape index: {}]   ;;  %s1084_s1 = inlined_call_operand.vmem [shape: f32[2,16,64], index: 1, kind: input, shape index: {}]   ;;  %s1085_s2 = inlined_call_operand.vmem [shape: f32[16,8], index: 2, kind: input, shape index: {}]   ;;  %s1086_s3 = inlined_call_operand.vmem [shape: f32[4,72], index: 3, kind: input, shape index: {}]   ;;  %s1087_s4 = inlined_call_operand.vmem [shape: f32[16,1], index: 4, kind: input, shape index: {}]   ;;  %s1088_s5 = inlined_call_operand.vmem [shape: f32[4,1], index: 5, kind: input, shape index: {}]   ;;  %s1089_s6 = inlined_call_operand.vmem [shape: f32[2,64], index: 6, kind: input, shape index: {}]   ;;  %s1090_s7 = inlined_call_operand.vmem [shape: f32[2,4,256], index: 7, kind: output, shape index: {}]  }
   0x1 LB: > { %s822_s25 = sadd.s32 4294967295, %s906_s24   ;;  %p826_p0 = scmp.ge.s32.totalorder %s906_s24, 1  ;;  %s906_s24 = sphi %s964_s24, %s17_s24  }
   0x2   : > { %p246_p1 = scmp.lt.s32.totalorder %s906_s24, 3 }
   0x4   : > { %p247_p2 = pnand %p826_p0, %p246_p1 }
   0x5   : > { %p282_p3 = scmp.lt.s32.totalorder (!%p247_p2), %s822_s25, 1  ;;  %v296_v0 = vld [vmem:[%s1085_s2] sm:$0xff] (!%p247_p2)  ;;  %vm311_vm0 = vcmask (!%p247_p2), 64512   ;;  %v908_v2 = vmov (!%p247_p2), 0   ;;  %s909_s9 = smov (!%p247_p2), 127   ;;  %vm399_vm1 = vcmask (!%p247_p2), 523264  }
   0x6   : > { %250 = sbr.rel (%p247_p2) target bundleno = 632 (0x278), region = 48  ;;  %v299_v1 = vld [vmem:[%s1087_s4] sm:$0xff] (!%p247_p2)  ;;  %846 = vmatprep.mubr.msk.f32.mxu0 (!%p247_p2), %vm311_vm0, %v296_v0  ;;  %889 = vset.pattern.permute.xlu0 (!%p247_p2), %v908_v2  ;;  %v300_v4 = vld [vmem:[%s1087_s4 + $0x8] sm:$0xff] (!%p247_p2)  ;;  %v910_v5 = vmov (!%p247_p2), 0.0   ;;  %s911_s18 = smov (!%p247_p2), 119   ;;  %vm397_vm2 = vcmask (!%p247_p2), 1048064  }
   0x7   : > { %v834_v3 = vld [vmem:[%s1089_s6] ss:$0 sm:$0xff] (!%p247_p2)  ;;  %303 = vperm.xlu0 (!%p247_p2), %889, %v299_v1   ;;  %741 = vmatprep.mubr.f32.mxu1 (!%p247_p2), %v910_v5  ;;  %v297_v7 = vld [vmem:[%s1085_s2 + $0x8] sm:$0xff] (!%p247_p2)  ;;  %v835_v8 = vld [vmem:[%s1089_s6 + $0x1] ss:$0 sm:$0xff] (!%p247_p2)  ;;  %s912_s21 = smov (!%p247_p2), 121  }
   0x8   : > { %524 = vrot.lane.b32.xlu1 (!%p247_p2), %v834_v3, %s909_s9  ;;  %s913_s22 = smov (!%p247_p2), 1   ;;  %s914_s23 = smov (!%p247_p2), 9   ;;  %vm413_vm3 = vcmask (!%p247_p2), 523268   ;;  %403 = vst.msk [vmem:[#allocation2 + $0x38] sm:$0xff] (!%p247_p2), %vm397_vm2, %v910_v5  ;;  %405 = vst.msk [vmem:[#allocation2 + $0x50] sm:$0xff] (!%p247_p2), %vm397_vm2, %v910_v5  ;;  %vm407_vm4 = vcmask (!%p247_p2), 519168  }
   0x9   : > { %s915_s26 = smov (!%p247_p2), 7   ;;  %s916_s27 = smov (!%p247_p2), 8   ;;  %398 = vst.msk [vmem:[#allocation2 + $0x8] sm:$0xff] (!%p247_p2), %vm397_vm2, %v910_v5  ;;  %401 = vst.msk [vmem:[#allocation2 + $0x20] sm:$0xff] (!%p247_p2), %vm397_vm2, %v910_v5  ;;  %v668_v44 = vld [vmem:[%s1088_s5] sm:$0xf] (!%p247_p2) }
   0xa   : > { %s917_s28 = smov (!%p247_p2), 72   ;;  %s918_s10 = smov (!%p247_p2), 71   ;;  %vm478_vm5 = vcmask (!%p247_p2), 588800   ;;  %vm535_vm6 = vcmask (!%p247_p2), 7168   ;;  %vm518_vm7 = vcmask (!%p247_p2), 580608   ;;  %vm459_vm8 = vcmask (!%p247_p2), 72704  }
   0xb   : > { %308 = vperm.xlu0 (!%p247_p2), %889, %v300_v4   ;;  %s919_s11 = smov (!%p247_p2), 64   ;;  %s920_s13 = smov (!%p247_p2), 63  }
   0xc   : > { %448 = vrot.lane.b32.xlu1 (!%p247_p2), %v834_v3, %s911_s18  ;;  %s921_s14 = smov (!%p247_p2), 56   ;;  %s923_s18 = smov (!%p247_p2), 55  }
   0xd   : > { %s1092_s25 = smov (!%p282_p3, %s822_s25), 1 }
   0xe   : > { %s827_s12 = sshll.u32 %s1092_s25, 3  ;;  %s839_s29 = sshll.u32 %s1092_s25, 4 }
   0xf   : > { %s285_s15 = scalar_lea.vmem %s1083_s0, %s827_s12  ;;  %507 = vrot.lane.b32.xlu0 %v835_v8, %s912_s21  ;;  %s290_s9 = scalar_lea.vmem %s1084_s1, %s839_s29 }
  0x10   : > { %v298_v6 = vld [vmem:[%s285_s15] sm:$0xff]  ;;  %559 = vrot.lane.b32.xlu1 %v835_v8, %s913_s22  ;;  %v425_v11 = vld [vmem:[%s290_s9 + $0x8] sm:$0xf]  ;;  %v434_v12 = vld [vmem:[%s290_s9 + $0xc] sm:$0xf]  ;;  %s922_s15 = smov 120  }
  0x11   : > { %844 = vmatprep.subr.mxu0 %v298_v6  ;;  %v409_v9 = vld [vmem:[%s290_s9] sm:$0xf]  ;;  %v419_v10 = vld [vmem:[%s290_s9 + $0x4] sm:$0xf]  ;;  %v427_v15 = vrot.slane %v425_v11, 4  ;;  %v436_v16 = vrot.slane %v434_v12, 4 }
  0x12   : > { %845 = vmatpush3.msra.mxu0 %v298_v6  ;;  %v411_v13 = vrot.slane %v409_v9, 4  ;;  %v421_v14 = vrot.slane %v419_v10, 4 }
  0x13   : > { %847 = vmatmul.mubr.msk.f32.vlgmr.msra.gmra.mrb[0].mxu0 %vm311_vm0, %v297_v7  ;;  %610 = vrot.lane.b32.xlu0 %v834_v3, %s915_s26  ;;  %429 = vst.msk [vmem:[#allocation2 + $0x38] sm:$0xf0] %vm413_vm3, %v427_v15  ;;  %438 = vst.msk [vmem:[#allocation2 + $0x50] sm:$0xf0] %vm413_vm3, %v436_v16 }
  0x14   : > { %640 = vrot.lane.b32.xlu1 %v835_v8, %s914_s23  ;;  %414 = vst.msk [vmem:[#allocation2 + $0x8] sm:$0xf0] %vm413_vm3, %v411_v13  ;;  %423 = vst.msk [vmem:[#allocation2 + $0x20] sm:$0xf0] %vm413_vm3, %v421_v14 }
  0x17   : > { %891 = vrot.lane.b32.xlu0 %v910_v5, %s916_s27 }
  0x1b   : > { %896 = vrot.lane.b32.xlu0 %v910_v5, %s917_s28 }
  0x7a   : > { %v525_v17 = vpop.permute.xlu1 %524 }
  0x7b   : > { %v527_v18 = vmul.f32 0.0, %v525_v17 }
  0x7d   : > { %531 = vrot.lane.b32.xlu0 %v527_v18, %s913_s22  ;;  %575 = vrot.lane.b32.xlu1 %v527_v18, %s913_s22 }
  0x7e   : > { %v449_v19 = vpop.permute.xlu1 %448 }
  0x7f   : > { %v451_v20 = vmul.f32 0.0, %v449_v19 }
  0x81   : > { %455 = vrot.lane.b32.xlu0 %v451_v20, %s914_s23 }
  0x82   : > { %v560_v35 = vpop.permute.xlu1 %559 }
  0x86   : > { %v304_v21 = vpop.permute.xlu0 %303  ;;  %v641_v45 = vpop.permute.xlu1 %640 }
  0x8a   : > { %v309_v22 = vpop.permute.xlu0 %308 }
  0x8e   : > { %v508_v23 = vpop.permute.xlu0 %507 }
  0x8f   : > { %v510_v24 = vmul.f32 0.0, %v508_v23 }
  0x91   : > { %514 = vrot.lane.b32.xlu0 %v510_v24, %s918_s10 }
  0x92   : > { %v611_v39 = vpop.permute.xlu0 %610 }
  0x96   : > { %v892_v47 = vpop.permute.xlu0 %891 }
  0x97   : > { %v893_v53 = vunpack.i.l.bf16 %v892_v47  ;;  %v894_v63 = vunpack.i.h.bf16 %v892_v47 }
  0x9a   : > { %v897_v48 = vpop.permute.xlu0 %896 }
  0x9b   : > { %v899_v54 = vunpack.i.h.bf16 %v897_v48  ;;  %v898_v7 = vunpack.i.l.bf16 %v897_v48 }
  0xe6   : > { %v848_v25 = vpop.f32.mrb[0].mxu0 }
  0xe7   : > { %v390_v26 = vadd.f32 %v848_v25, %v309_v22  ;;  %v384_v27 = vpop.f32.mrb[1].mxu0 }
  0xe8   : > { %v385_v28 = vadd.f32 %v384_v27, %v304_v21 }
  0xe9   : > { %424 = vst.msk [vmem:[#allocation2 + $0x38] sm:$0xf] %vm407_vm4, %v390_v26  ;;  %v431_v29 = vrot.slane %v390_v26, 4 }
  0xea   : > { %408 = vst.msk [vmem:[#allocation2 + $0x8] sm:$0xf] %vm407_vm4, %v385_v28  ;;  %v416_v30 = vrot.slane %v385_v28, 4 }
  0xeb   : > { %433 = vst.msk [vmem:[#allocation2 + $0x50] sm:$0xf] %vm407_vm4, %v431_v29 }
  0xec   : > { %418 = vst.msk [vmem:[#allocation2 + $0x20] sm:$0xf] %vm407_vm4, %v416_v30 }
  0xef   : > { %v532_v49 = vpop.permute.xlu0 %531  ;;  %v576_v51 = vpop.permute.xlu1 %575 }
  0xf0   : > { %v501_v31 = vld [vmem:[#allocation2 + $0x38] sm:$0xff] }
  0xf1   : > { %v558_v32 = vld [vmem:[#allocation2 + $0x8] sm:$0xff]  ;;  %469 = vrot.lane.b32.xlu1 %v501_v31, %s916_s27  ;;  %584 = vst.msk [vmem:[#allocation3 + $0x70] sm:$0xff] %vm399_vm1, %v501_v31  ;;  %590 = vst.msk [vmem:[#allocation3 + $0x48] sm:$0xff] %vm399_vm1, %v501_v31  ;;  %v511_v38 = vmul.f32 %v508_v23, %v501_v31  ;;  %v602_v43 = vmul.f32 %v560_v35, %v501_v31 }
  0xf2   : > { %v442_v33 = vld [vmem:[#allocation2 + $0x50] sm:$0xff]  ;;  %541 = vst.msk [vmem:[#allocation3 + $0x40] sm:$0xff] %vm399_vm1, %v558_v32  ;;  %547 = vst.msk [vmem:[#allocation3 + $0x18] sm:$0xff] %vm399_vm1, %v558_v32  ;;  %v562_v36 = vmul.f32 %v560_v35, %v558_v32  ;;  %v643_v46 = vmul.f32 %v641_v45, %v558_v32 }
  0xf3   : > { %v609_v34 = vld [vmem:[#allocation2 + $0x20] sm:$0xff]  ;;  %495 = vrot.lane.b32.xlu0 %v442_v33, %s917_s28  ;;  %593 = vst.msk [vmem:[#allocation3 + $0x80] sm:$0xff] %vm399_vm1, %v442_v33  ;;  %599 = vst.msk [vmem:[#allocation3 + $0x58] sm:$0xff] %vm399_vm1, %v442_v33  ;;  %v572_v37 = vmul.f32 %v525_v17, %v442_v33  ;;  %v452_v40 = vmul.f32 %v449_v19, %v442_v33  ;;  %v456_v50 = vpop.permute.xlu0 %455 }
  0xf4   : > { %550 = vst.msk [vmem:[#allocation3 + $0x50] sm:$0xff] %vm399_vm1, %v609_v34  ;;  %556 = vst.msk [vmem:[#allocation3 + $0x28] sm:$0xff] %vm399_vm1, %v609_v34  ;;  %v613_v41 = vmul.f32 %v611_v39, %v609_v34  ;;  %v528_v42 = vmul.f32 %v609_v34, %v525_v17 }
  0xf5   : > { %476 = vrot.lane.b32.xlu1 %v501_v31, %s917_s28 }
  0xf7   : > { %552 = vrot.lane.b32.xlu0 %v609_v34, %s919_s11 }
  0xf9   : > { %543 = vrot.lane.b32.xlu1 %v558_v32, %s919_s11 }
  0xfb   : > { %564 = vrot.lane.b32.xlu0 %v562_v36, %s920_s13 }
  0xfd   : > { %488 = vrot.lane.b32.xlu1 %v442_v33, %s916_s27 }
  0xff   : > { %577 = vrot.lane.b32.xlu0 %v572_v37, %s913_s22 }
 0x101   : > { %516 = vrot.lane.b32.xlu1 %v511_v38, %s918_s10 }
 0x103   : > { %595 = vrot.lane.b32.xlu0 %v442_v33, %s919_s11  ;;  %v515_v52 = vpop.permute.xlu0 %514 }
 0x105   : > { %457 = vrot.lane.b32.xlu1 %v452_v40, %s914_s23  ;;  %s295_s23 = scalar_lea.vmem %s1090_s7, %s827_s12 }
 0x107   : > { %615 = vrot.lane.b32.xlu0 %v613_v41, %s912_s21 }
 0x109   : > { %533 = vrot.lane.b32.xlu1 %v528_v42, %s913_s22 }
 0x10b   : > { %625 = vrot.lane.b32.xlu0 %v558_v32, %s921_s14 }
 0x10d   : > { %586 = vrot.lane.b32.xlu1 %v501_v31, %s919_s11 }
 0x10f   : > { %631 = vrot.lane.b32.xlu0 %v609_v34, %s922_s15 }
 0x111   : > { %604 = vrot.lane.b32.xlu1 %v602_v43, %s920_s13 }
 0x113   : > { %671 = vperm.xlu0 %889, %v668_v44  }
 0x115   : > { %621 = vrot.lane.b32.xlu1 %v558_v32, %s922_s15 }
 0x119   : > { %635 = vrot.lane.b32.xlu1 %v609_v34, %s921_s14 }
 0x11d   : > { %645 = vrot.lane.b32.xlu1 %v643_v46, %s923_s18  ;;  %v649_v46 = vld [vmem:[%s1086_s3] sm:$0xf] }
 0x163   : > { %v470_v55 = vpop.permute.xlu1 %469 }
 0x164   : > { %v471_v56 = vsel %vm311_vm0, %v893_v53, %v470_v55 }
 0x165   : > { %473 = vst.msk [vmem:[#allocation3 + $0x10] sm:$0xff] %vm399_vm1, %v471_v56  ;;  %v496_v57 = vpop.permute.xlu0 %495 }
 0x166   : > { %v497_v58 = vsel %vm478_vm5, %v899_v54, %v496_v57 }
 0x167   : > { %499 = vst.msk [vmem:[#allocation3 + $0x10] sm:$0xff] %vm397_vm2, %v497_v58  ;;  %v477_v59 = vpop.permute.xlu1 %476 }
 0x168   : > { %v479_v10 = vsel %vm478_vm5, %v898_v7, %v477_v59 }
 0x169   : > { %v553_v60 = vpop.permute.xlu0 %552 }
 0x16a   : > { %555 = vst.msk [vmem:[#allocation3 + $0x40] sm:$0xff] %vm397_vm2, %v553_v60  ;;  %557 = vst.msk [vmem:[#allocation3 + $0x18] sm:$0xff] %vm397_vm2, %v553_v60 }
 0x16b   : > { %v544_v61 = vpop.permute.xlu1 %543 }
 0x16d   : > { %v565_v62 = vpop.permute.xlu0 %564 }
 0x16e   : > { %567 = vst.msk [vmem:[#allocation3 + $0x50] sm:$0xff] %vm397_vm2, %v565_v62  ;;  %568 = vst.msk [vmem:[#allocation3 + $0x28] sm:$0xff] %vm397_vm2, %v565_v62  ;;  %v652_v22 = vld [vmem:[#allocation3 + $0x10] sm:$0xff] }
 0x16f   : > { %v489_v0 = vpop.permute.xlu1 %488 }
 0x170   : > { %v490_v1 = vsel %vm311_vm0, %v894_v63, %v489_v0 }
 0x171   : > { %492 = vst.msk [vmem:[#allocation3 + $0x20] sm:$0xff] %vm399_vm1, %v490_v1  ;;  %v578_v2 = vpop.permute.xlu0 %577  ;;  %v653_v20 = vld [vmem:[#allocation3 + $0x18] sm:$0xff]  ;;  %v658_v36 = vld [vmem:[#allocation3 + $0x40] sm:$0xff] }
 0x172   : > { %v579_v3 = vsel %vm535_vm6, %v576_v51, %v578_v2 }
 0x173   : > { %581 = vst.msk [vmem:[#allocation3 + $0x60] sm:$0xff] %vm399_vm1, %v579_v3  ;;  %582 = vst.msk [vmem:[#allocation3 + $0x38] sm:$0xff] %vm399_vm1, %v579_v3  ;;  %v517_v4 = vpop.permute.xlu1 %516 }
 0x174   : > { %v519_v5 = vsel %vm518_vm7, %v515_v52, %v517_v4 }
 0x175   : > { %521 = vst.msk [vmem:[#allocation3 + $0x20] sm:$0xff] %vm397_vm2, %v519_v5  ;;  %v596_v6 = vpop.permute.xlu0 %595  ;;  %v655_v25 = vld [vmem:[#allocation3 + $0x28] sm:$0xff]  ;;  %v660_v35 = vld [vmem:[#allocation3 + $0x50] sm:$0xff] }
 0x176   : > { %598 = vst.msk [vmem:[#allocation3 + $0x70] sm:$0xff] %vm397_vm2, %v596_v6  ;;  %600 = vst.msk [vmem:[#allocation3 + $0x48] sm:$0xff] %vm397_vm2, %v596_v6  ;;  %v859_v38 = vpack.c.bf16 %v660_v35, %v658_v36 }
 0x177   : > { %v458_v8 = vpop.permute.xlu1 %457 }
 0x178   : > { %v460_v9 = vsel %vm459_vm8, %v456_v50, %v458_v8 }
 0x179   : > { %462 = vst.msk [vmem:[#allocation3] sm:$0xff] %vm399_vm1, %v460_v9  ;;  %v616_v11 = vpop.permute.xlu0 %615 }
 0x17a   : > { %481 = vst.msk [vmem:[#allocation3] sm:$0xff] %vm397_vm2, %v479_v10 }
 0x17b   : > { %618 = vst.msk [vmem:[#allocation3 + $0x68] sm:$0xff] %vm399_vm1, %v616_v11  ;;  %v534_v12 = vpop.permute.xlu1 %533 }
 0x17c   : > { %v536_v13 = vsel %vm535_vm6, %v532_v49, %v534_v12  ;;  %v654_v29 = vld [vmem:[#allocation3 + $0x20] sm:$0xff] }
 0x17d   : > { %538 = vst.msk [vmem:[#allocation3 + $0x30] sm:$0xff] %vm399_vm1, %v536_v13  ;;  %539 = vst.msk [vmem:[#allocation3 + $0x8] sm:$0xff] %vm399_vm1, %v536_v13  ;;  %v626_v14 = vpop.permute.xlu0 %625  ;;  %v659_v32 = vld [vmem:[#allocation3 + $0x48] sm:$0xff]  ;;  %v664_v43 = vld [vmem:[#allocation3 + $0x70] sm:$0xff] }
 0x17e   : > { %546 = vst.msk [vmem:[#allocation3 + $0x30] sm:$0xff] %vm397_vm2, %v544_v61  ;;  %548 = vst.msk [vmem:[#allocation3 + $0x8] sm:$0xff] %vm397_vm2, %v544_v61 }
 0x17f   : > { %628 = vst.msk [vmem:[#allocation3 + $0x68] sm:$0xff] %vm397_vm2, %v626_v14  ;;  %v587_v15 = vpop.permute.xlu1 %586 }
 0x180   : > { %589 = vst.msk [vmem:[#allocation3 + $0x60] sm:$0xff] %vm397_vm2, %v587_v15  ;;  %591 = vst.msk [vmem:[#allocation3 + $0x38] sm:$0xff] %vm397_vm2, %v587_v15 }
 0x181   : > { %v632_v16 = vpop.permute.xlu0 %631  ;;  %v650_v18 = vld [vmem:[#allocation3] sm:$0xff] }
 0x182   : > { %634 = vst.msk [vmem:[#allocation3 + $0x88] sm:$0xff] %vm399_vm1, %v632_v16  ;;  %v851_v24 = vpack.c.bf16 %v652_v22, %v650_v18 }
 0x183   : > { %v605_v17 = vpop.permute.xlu1 %604 }
 0x184   : > { %607 = vst.msk [vmem:[#allocation3 + $0x80] sm:$0xff] %vm397_vm2, %v605_v17  ;;  %608 = vst.msk [vmem:[#allocation3 + $0x58] sm:$0xff] %vm397_vm2, %v605_v17 }
 0x185   : > { %v651_v19 = vld [vmem:[#allocation3 + $0x8] sm:$0xff]  ;;  %v656_v28 = vld [vmem:[#allocation3 + $0x30] sm:$0xff] }
 0x186   : > { %v849_v21 = vpack.c.bf16 %v653_v20, %v651_v19  ;;  %v855_v31 = vpack.c.bf16 %v656_v28, %v654_v29  ;;  %v663_v40 = vld [vmem:[#allocation3 + $0x68] sm:$0xff] }
 0x187   : > { %v622_v23 = vpop.permute.xlu1 %621  ;;  %v657_v26 = vld [vmem:[#allocation3 + $0x38] sm:$0xff]  ;;  %v662_v39 = vld [vmem:[#allocation3 + $0x60] sm:$0xff] }
 0x188   : > { %624 = vst.msk [vmem:[#allocation3 + $0x78] sm:$0xff] %vm399_vm1, %v622_v23  ;;  %850 = vmatprep.subr.bf16.mxu1 %v849_v21  ;;  %v853_v27 = vpack.c.bf16 %v657_v26, %v655_v25  ;;  %v863_v44 = vpack.c.bf16 %v664_v43, %v662_v39 }
 0x189   : > { %852 = vmatpush1.bf16.msra.mxu1 %v851_v24 }
 0x18a   : > { %854 = vmatprep.subr.bf16.mxu1 %v853_v27 }
 0x18b   : > { %v636_v30 = vpop.permute.xlu1 %635  ;;  %v661_v33 = vld [vmem:[#allocation3 + $0x58] sm:$0xff]  ;;  %v666_v47 = vld [vmem:[#allocation3 + $0x80] sm:$0xff] }
 0x18c   : > { %638 = vst.msk [vmem:[#allocation3 + $0x78] sm:$0xff] %vm397_vm2, %v636_v30  ;;  %v857_v34 = vpack.c.bf16 %v661_v33, %v659_v32 }
 0x18d   : > { %856 = vmatpush1.bf16.msra.mxu1 %v855_v31 }
 0x18e   : > { %858 = vmatprep.subr.bf16.mxu1 %v857_v34 }
 0x18f   : > { %v646_v37 = vpop.permute.xlu1 %645 }
 0x190   : > { %648 = vst.msk [vmem:[#allocation3 + $0x88] sm:$0xff] %vm397_vm2, %v646_v37 }
 0x191   : > { %860 = vmatpush1.bf16.msra.mxu1 %v859_v38 }
 0x192   : > { %v672_v48 = vpop.permute.xlu0 %671 }
 0x193   : > { %v665_v41 = vld [vmem:[#allocation3 + $0x78] sm:$0xff] }
 0x194   : > { %v861_v42 = vpack.c.bf16 %v665_v41, %v663_v40 }
 0x196   : > { %862 = vmatprep.subr.bf16.mxu1 %v861_v42 }
 0x197   : > { %864 = vmatpush1.bf16.msra.mxu1 %v863_v44  ;;  %v667_v45 = vld [vmem:[#allocation3 + $0x88] sm:$0xff] }
 0x198   : > { %693 = vmatprep.subr.mxu1 %v667_v45 }
 0x19b   : > { %694 = vmatpush1.msra.mxu1 %v666_v47 }
 0x19c   : > { %836 = vmatmul.mubr.msk.f32.vlgmr.msra.gmra.mrb[0].mxu1 %vm478_vm5, %v649_v46 }
 0x26f   : > { %v743_v49 = vpop.f32.mrb[0].mxu1 }
 0x270   : > { %v744_v50 = vadd.f32 %v743_v49, %v672_v48  ;;  %v745_v51 = vpop.f32.mrb[1].mxu1 }
 0x271   : > { %v746_v52 = vadd.f32 %v745_v51, %v672_v48 }
 0x272   : > { %v748_v53 = vmax.f32 %v744_v50, 0.0 }
 0x273   : > { %v749_v54 = vmax.f32 %v746_v52, 0.0 }
 0x275   : > { %v752_v55 = vcombine.low %v748_v53, %v749_v54 }
 0x277   : > { %754 = vst [vmem:[%s295_s23] sm:$0xff] %v752_v55 }
 0x278 PF: > { %s17_s24 = sadd.s32 1, %s906_s24  }
 0x279   : > { %p14_p4 = scmp.ge.s32.totalorder %s17_s24, 4  }
 0x27b   :  { %16 = sbr.rel (!%p14_p4) target bundleno = 1 (0x1), region = 81 }

</bundles_post_ra>
